<compile_context>
chip_gen: v7x
topology: tpu7x:2x2x1
jax: 0.10.0
libtpu: 0.0.40
codegen_flags: <defaults>
</compile_context>

<pallas_src>
import jax
import jax.numpy as jnp
from jax.experimental import pallas as pl
from jax.experimental.pallas import tpu as pltpu

_LANE = 128   # lane width: last-dim padding target for dense stores / MXU feed
_SUB = 32     # batch-tile granularity (covers f32/bf16/int8 sublane tiling)


def _round_up(a: int, m: int) -> int:
    return (a + m - 1) // m * m


def _cdiv(a: int, b: int) -> int:
    return (a + b - 1) // b


def _forecast_kernel(tgt_ref, w1_ref, b1_ref, w2_ref, b2_ref, o_ref):
    # past_observed_values == ones -> the mask multiply is an identity and is
    # folded away entirely (never materialized / DMA'd / multiplied).
    # Fused squeeze+cast: activation arrives f32 and is cast to bf16 here,
    # right before the MXU dot (review item 2).
    t = tgt_ref[...].astype(w1_ref.dtype)                       # (TB, S) bf16
    # (TB, S) @ (S, Hp): bf16 operands, f32 accumulation on the MXU.
    h = jnp.dot(t, w1_ref[...], preferred_element_type=jnp.float32)
    # Bias add + relu stay in the f32 accumulator (v5e has no bf16 VPU/EUP).
    h = jnp.maximum(h + b1_ref[...], 0.0)
    # (TB, Hp) @ (Hp, Pp): second matmul also on the bf16 MXU path.
    out = jnp.dot(h.astype(w2_ref.dtype), w2_ref[...],
                  preferred_element_type=jnp.float32)
    o_ref[...] = (out + b2_ref[...]).astype(o_ref.dtype)


def pack_forecast_params(w1, b1, w2, b2, compute_dtype=jnp.bfloat16):
    """One-time weight packing (review item 3): lane-pad H/P to multiples of
    128 and cast weights to the MXU compute dtype.  Zero padding is exact:
    relu(0 + 0) = 0 and zero rows/cols of W2 contribute nothing."""
    S, H = w1.shape
    P = w2.shape[1]
    Hp = _round_up(H, _LANE)
    Pp = _round_up(P, _LANE)
    w1_p = jnp.zeros((S, Hp), compute_dtype).at[:, :H].set(w1.astype(compute_dtype))
    b1_p = jnp.zeros((1, Hp), jnp.float32).at[:, :H].set(
        b1.reshape(1, H).astype(jnp.float32))
    w2_p = jnp.zeros((Hp, Pp), compute_dtype).at[:H, :P].set(w2.astype(compute_dtype))
    b2_p = jnp.zeros((1, Pp), jnp.float32).at[:, :P].set(
        b2.reshape(1, P).astype(jnp.float32))
    return {"w1": w1_p, "b1": b1_p, "w2": w2_p, "b2": b2_p,
            "seq_len": S, "pred_len": P}


def wrapped_forecast_model(x, params, *, tile_b: int = 256):
    """x: (batch, seq_len, feat_dim=1) -> forecast (batch, pred_len)."""
    B, S, F = x.shape
    assert F == 1, "feat_dim must be 1 so that squeeze(-1) removes it"
    assert params["seq_len"] == S, "packed weights do not match seq_len"
    w1_p, b1_p = params["w1"], params["b1"]
    w2_p, b2_p = params["w2"], params["b2"]
    Hp = w1_p.shape[1]
    Pp = w2_p.shape[1]
    P = params["pred_len"]

    # squeeze(-1) as a metadata-only reshape; no wrapper-side cast or padding
    # of the activations (review items 1-2).
    past_target = x.reshape(B, S)

    # Batch tile: multiple of 32 sublanes (validated), capped at ceil(B/2) so
    # the grid has >= 2 tiles whenever B > 32, letting "parallel" shard the
    # batch axis across both v7x TensorCores (review item 4; no-op on v5e/v6e).
    tile_b = _round_up(max(int(tile_b), _SUB), _SUB)
    TB = min(tile_b, _round_up(_cdiv(B, 2), _SUB))
    if TB >= B:
        TB = B                       # single full-batch block (always legal)
    grid = (pl.cdiv(B, TB),)

    out_p = pl.pallas_call(
        _forecast_kernel,
        out_shape=jax.ShapeDtypeStruct((B, Pp), jnp.float32),
        grid=grid,
        in_specs=[
            # Batch-tiled f32 activation stream; ragged last tile handled by
            # Pallas partial-block DMA.
            pl.BlockSpec((TB, S), lambda i: (i, 0)),
            # Grid-invariant weights/biases: index_map (0, 0) keeps them
            # VMEM-resident across all batch tiles.
            pl.BlockSpec((S, Hp), lambda i: (0, 0)),
            pl.BlockSpec((1, Hp), lambda i: (0, 0)),
            pl.BlockSpec((Hp, Pp), lambda i: (0, 0)),
            pl.BlockSpec((1, Pp), lambda i: (0, 0)),
        ],
        # Lane-dense (Pp multiple of 128) output block -> unmasked full vst.
        out_specs=pl.BlockSpec((TB, Pp), lambda i: (i, 0)),
        compiler_params=pltpu.CompilerParams(
            dimension_semantics=("parallel",)),
    )(past_target, w1_p, b1_p, w2_p, b2_p)

    # Strip the lane padding back off (the batch axis was never padded).
    return out_p[:, :P]


def _reference(x, w1, b1, w2, b2, compute_dtype=jnp.bfloat16):
    # Mirrors the kernel's numerics: bf16 operands, f32 accumulation,
    # f32 bias/relu, bf16 re-cast before the second matmul.
    t = x.reshape(x.shape[0], x.shape[1]).astype(compute_dtype).astype(jnp.float32)
    # past_observed_values = ones -> identity mask (omitted).
    h = t @ w1.astype(compute_dtype).astype(jnp.float32) + b1.astype(jnp.float32)
    h = jnp.maximum(h, 0.0).astype(compute_dtype).astype(jnp.float32)
    return h @ w2.astype(compute_dtype).astype(jnp.float32) + b2.astype(jnp.float32)


if __name__ == "__main__":
    # Small shapes consistent with the forward: batch=2, seq_len=8, feat_dim=1
    B, S, F = 2, 8, 1
    HIDDEN, PRED_LEN = 32, 8

    key = jax.random.PRNGKey(0)
    kx, k1, k2, k3, k4 = jax.random.split(key, 5)

    x = jax.random.normal(kx, (B, S, F), dtype=jnp.float32)
    w1 = jax.random.normal(k1, (S, HIDDEN), dtype=jnp.float32) * 0.1
    b1 = jax.random.normal(k2, (1, HIDDEN), dtype=jnp.float32) * 0.01
    w2 = jax.random.normal(k3, (HIDDEN, PRED_LEN), dtype=jnp.float32) * 0.1
    b2 = jax.random.normal(k4, (1, PRED_LEN), dtype=jnp.float32) * 0.01

    # Weights are packed once, at "model construction" time (review item 3).
    params = pack_forecast_params(w1, b1, w2, b2)

    forecast = jax.jit(lambda inp: wrapped_forecast_model(inp, params))
    out = jax.block_until_ready(forecast(x))

    ref = _reference(x, w1, b1, w2, b2)
    assert out.shape == (B, PRED_LEN), out.shape
    # Tolerance scales with seq_len (MXU vs XLA f32 accumulation order).
    tol = 1e-3 * max(1.0, float(S) ** 0.5)
    max_err = float(jnp.max(jnp.abs(out - ref)))
    assert jnp.allclose(out, ref, atol=tol, rtol=tol), f"max abs err {max_err}"

    print("KERNEL_OK")
</pallas_src>

<mosaic_0001>
module attributes {stable_mosaic.version = 11 : i64} {
  func.func @_forecast_kernel(%arg0: i32, %arg1: memref<2x8xf32, #tpu.memory_space<vmem>>, %arg2: memref<8x128xbf16, #tpu.memory_space<vmem>>, %arg3: memref<1x128xf32, #tpu.memory_space<vmem>>, %arg4: memref<128x128xbf16, #tpu.memory_space<vmem>>, %arg5: memref<1x128xf32, #tpu.memory_space<vmem>>, %arg6: memref<2x128xf32, #tpu.memory_space<vmem>>) attributes {dimension_semantics = [#tpu.dimension_semantics<parallel>], iteration_bounds = array<i64: 1>, scalar_prefetch = 0 : i64, scratch_operands = 0 : i64, tpu.core_type = #tpu.core_type<tc>, window_params = [{transform_indices = @transform_0, window_bounds = array<i64: 2, 8>}, {pipeline_mode = #tpu.pipeline_mode<synchronous>, transform_indices = @transform_1, window_bounds = array<i64: 8, 128>}, {pipeline_mode = #tpu.pipeline_mode<synchronous>, transform_indices = @transform_2, window_bounds = array<i64: 1, 128>}, {pipeline_mode = #tpu.pipeline_mode<synchronous>, transform_indices = @transform_3, window_bounds = array<i64: 128, 128>}, {pipeline_mode = #tpu.pipeline_mode<synchronous>, transform_indices = @transform_4, window_bounds = array<i64: 1, 128>}, {transform_indices = @transform_5, window_bounds = array<i64: 2, 128>}]} {
    %c0 = arith.constant 0 : index
    %c0_0 = arith.constant 0 : index
    %0 = vector.load %arg1[%c0, %c0_0] : memref<2x8xf32, #tpu.memory_space<vmem>>, vector<2x8xf32>
    %1 = arith.truncf %0 : vector<2x8xf32> to vector<2x8xbf16>
    %c0_1 = arith.constant 0 : index
    %c0_2 = arith.constant 0 : index
    %2 = vector.load %arg2[%c0_1, %c0_2] : memref<8x128xbf16, #tpu.memory_space<vmem>>, vector<8x128xbf16>
    %cst = arith.constant dense<0.000000e+00> : vector<2x128xf32>
    %3 = tpu.matmul %1, %2, %cst {dimension_numbers = #tpu.dot_dimension_numbers<[1], [0], [0], [1], [0, 0, 1, 1], [], []>} : vector<2x8xbf16>, vector<8x128xbf16>, vector<2x128xf32> -> vector<2x128xf32>
    %c0_3 = arith.constant 0 : index
    %c0_4 = arith.constant 0 : index
    %4 = vector.load %arg3[%c0_3, %c0_4] : memref<1x128xf32, #tpu.memory_space<vmem>>, vector<1x128xf32>
    %5 = vector.broadcast %4 : vector<1x128xf32> to vector<2x128xf32>
    %6 = arith.addf %3, %5 : vector<2x128xf32>
    %cst_5 = arith.constant 0.000000e+00 : f32
    %7 = vector.broadcast %cst_5 : f32 to vector<2x128xf32>
    %8 = arith.maximumf %6, %7 : vector<2x128xf32>
    %9 = arith.truncf %8 : vector<2x128xf32> to vector<2x128xbf16>
    %c0_6 = arith.constant 0 : index
    %c0_7 = arith.constant 0 : index
    %10 = vector.load %arg4[%c0_6, %c0_7] : memref<128x128xbf16, #tpu.memory_space<vmem>>, vector<128x128xbf16>
    %cst_8 = arith.constant dense<0.000000e+00> : vector<2x128xf32>
    %11 = tpu.matmul %9, %10, %cst_8 {dimension_numbers = #tpu.dot_dimension_numbers<[1], [0], [0], [1], [0, 0, 1, 1], [], []>} : vector<2x128xbf16>, vector<128x128xbf16>, vector<2x128xf32> -> vector<2x128xf32>
    %c0_9 = arith.constant 0 : index
    %c0_10 = arith.constant 0 : index
    %12 = vector.load %arg5[%c0_9, %c0_10] : memref<1x128xf32, #tpu.memory_space<vmem>>, vector<1x128xf32>
    %13 = vector.broadcast %12 : vector<1x128xf32> to vector<2x128xf32>
    %14 = arith.addf %11, %13 : vector<2x128xf32>
    %c0_11 = arith.constant 0 : index
    %c0_12 = arith.constant 0 : index
    %15 = vector.load %arg6[%c0_11, %c0_12] : memref<2x128xf32, #tpu.memory_space<vmem>>, vector<2x128xf32>
    tpu.vector_store %arg6[%c0_11, %c0_12], %14 {strides = array<i32>} : memref<2x128xf32, #tpu.memory_space<vmem>>, vector<2x128xf32>,
    return
  }
  func.func @transform_0(%arg0: i32) -> (i32, i32) {
    %c0_i32 = arith.constant 0 : i32
    %c0_i32_0 = arith.constant 0 : i32
    return %arg0, %c0_i32 : i32, i32
  }
  func.func @transform_1(%arg0: i32) -> (i32, i32) {
    %c0_i32 = arith.constant 0 : i32
    %c0_i32_0 = arith.constant 0 : i32
    %c0_i32_1 = arith.constant 0 : i32
    return %c0_i32, %c0_i32_0 : i32, i32
  }
  func.func @transform_2(%arg0: i32) -> (i32, i32) {
    %c0_i32 = arith.constant 0 : i32
    %c0_i32_0 = arith.constant 0 : i32
    %c0_i32_1 = arith.constant 0 : i32
    return %c0_i32, %c0_i32_0 : i32, i32
  }
  func.func @transform_3(%arg0: i32) -> (i32, i32) {
    %c0_i32 = arith.constant 0 : i32
    %c0_i32_0 = arith.constant 0 : i32
    %c0_i32_1 = arith.constant 0 : i32
    return %c0_i32, %c0_i32_0 : i32, i32
  }
  func.func @transform_4(%arg0: i32) -> (i32, i32) {
    %c0_i32 = arith.constant 0 : i32
    %c0_i32_0 = arith.constant 0 : i32
    %c0_i32_1 = arith.constant 0 : i32
    return %c0_i32, %c0_i32_0 : i32, i32
  }
  func.func @transform_5(%arg0: i32) -> (i32, i32) {
    %c0_i32 = arith.constant 0 : i32
    %c0_i32_0 = arith.constant 0 : i32
    return %arg0, %c0_i32 : i32, i32
  }
}

</mosaic_0001>

<bundles_post_ra>
// kernel: _lambda_.1
= control target key start
LH: loop header
LB: loop body
LE: loop exit
PB: predicated region body
PF: predicated region fallthrough
CT: control target
= control target key end

     0   :  { %10 = vsyncpa [#allocation3], 0  ;;  %s405_s0 = inlined_call_operand.vmem [shape: f32[2,8], index: 0, kind: input, shape index: {}]   ;;  %s406_s1 = inlined_call_operand.vmem [shape: bf16[8,128], index: 1, kind: input, shape index: {}]   ;;  %s407_s2 = inlined_call_operand.vmem [shape: f32[1,128], index: 2, kind: input, shape index: {}]   ;;  %s408_s3 = inlined_call_operand.hbm [shape: bf16[128,128], index: 3, kind: input, shape index: {}]   ;;  %s409_s4 = inlined_call_operand.vmem [shape: f32[1,128], index: 4, kind: input, shape index: {}]   ;;  %s410_s5 = inlined_call_operand.hbm [shape: f32[2,128], index: 5, kind: output, shape index: {}]  }
   0x1   :  { %11 = vsyncpa [#allocation4], 0  ;;  %s333_s18 = smov [#allocation2]   ;;  %s285_s22 = scalar_lea.hbm %s408_s3, 1024 }
   0x2   :  { %s23_s19 = sshll.u32 %s333_s18, 4  ;;  %p286_p0 = scmp.ne.s32.totalorder %s408_s3, %s285_s22  ;;  %s24_s19 = int_to_ptr.vmem [resolvable:$true] %s23_s19 }
   0x3   :  { %p289_p1 = scmp.lt.u32.totalorder %s285_s22, %s408_s3 }
   0x5   :  { %p291_p2 = pnand %p289_p1, %p286_p0 }
   0x7   :  { %294 = shalt.err (!%p291_p2)
}
   0x8   :  { %s295_s27 = scalar_lea.vmem %s24_s19, 1024  ;;  %p300_p4 = scmp.lt.s32.totalorder %s24_s19, %s24_s19 }
   0x9   :  { %p296_p3 = scmp.ne.s32.totalorder %s24_s19, %s295_s27  ;;  %p301_p5 = scmp.lt.s32.totalorder %s295_s27, %s295_s27 }
   0xb   :  { %p302_p6 = por %p301_p5, %p300_p4 }
   0xd   :  { %p303_p7 = pnand %p302_p6, %p296_p3 }
   0xf   :  { %306 = shalt.err (!%p303_p7)
}
  0x10   :  { %s334_s28 = smov 64   ;;  %s335_s29 = smov 4  }
  0x11   :  { %29 = dma.hbm_to_vmem [thread:$0]  %s408_s3, 1024, %s24_s19, [#allocation3], %s334_s28, %s334_s28, %s335_s29  }
  0x12   :  { %329 = dma.done.wait [#allocation3], 1024  }
  0x13   :  { %330 = vsyncadd [#allocation3], 4294966272  ;;  %v336_v0 = vmov 0.0   ;;  %vm337_vm0 = vmmov 0   ;;  %vm50_vm1 = vcmask 1043456   ;;  %v277_v5 = vld [vmem:[#allocation2] sm:$0xff]  }
  0x14   :  { %245 = vmatprep.subr.bf16.mxu0 %v336_v0  ;;  %247 = vmatprep.mubr.msk.bf16.mxu0 %vm337_vm0, %v336_v0  ;;  %v38_v1 = vld [vmem:[%s406_s1] sm:$0xf]  ;;  %vm46_vm2 = vcmask 64512   ;;  %v278_v6 = vld [vmem:[#allocation2 + $0x8] sm:$0xff]   ;;  %v279_v7 = vld [vmem:[#allocation2 + $0x10] sm:$0xff]   ;;  %s338_s12 = smov [#allocation5]  }
  0x15   :  { %251 = vmatprep.subr.bf16.mxu1 %v336_v0  ;;  %267 = vmatprep.mubr.msk.bf16.mxu1 %vm337_vm0, %v336_v0  ;;  %v36_v2 = vld [vmem:[%s405_s0] sm:$0x3]  ;;  %v52_v3 = vsel %vm50_vm1, %v38_v1, 0  ;;  %v280_v8 = vld [vmem:[#allocation2 + $0x18] sm:$0xff]   ;;  %v282_v10 = vld [vmem:[#allocation2 + $0x28] sm:$0xff]   ;;  %s214_s13 = sshll.u32 %s338_s12, 4  ;;  %s215_s13 = int_to_ptr.vmem [resolvable:$true] %s214_s13 }
  0x16   :  { %v37_v4 = vpack.c.bf16 %v36_v2, %v36_v2  ;;  %246 = vmatpush3.bf16.msra.mxu0 %v52_v3  ;;  %252 = vmatpush3.bf16.msra.mxu1 %v277_v5  ;;  %v281_v9 = vld [vmem:[#allocation2 + $0x20] sm:$0xff]   ;;  %v283_v11 = vld [vmem:[#allocation2 + $0x30] sm:$0xff]   ;;  %v284_v12 = vld [vmem:[#allocation2 + $0x38] sm:$0xff]   ;;  %p312_p9 = scmp.lt.s32.totalorder %s215_s13, %s215_s13 }
  0x17   :  { %253 = vmatprep.subr.bf16.mxu1 %v336_v0  ;;  %v223_v13 = vld [vmem:[%s407_s2] ss:$0 sm:$0xff]  ;;  %s307_s2 = scalar_lea.vmem %s215_s13, 32 }
  0x18   :  { %v225_v21 = vld [vmem:[%s409_s4] ss:$0 sm:$0xff]  ;;  %p308_p8 = scmp.ne.s32.totalorder %s215_s13, %s307_s2  ;;  %p313_p10 = scmp.lt.s32.totalorder %s307_s2, %s307_s2 }
  0x19   :  { %248 = vmatmul.mubr.msk.bf16.vlgmr.msra.gmra.mrb[0].mxu0 %vm46_vm2, %v37_v4 }
  0x1a   :  { %254 = vmatpush3.bf16.msra.mxu1 %v278_v6  ;;  %p314_p11 = por %p313_p10, %p312_p9 }
  0x1b   :  { %255 = vmatprep.subr.bf16.mxu1 %v336_v0 }
  0x1c   :  { %p315_p12 = pnand %p314_p11, %p308_p8 }
  0x1e   :  { %256 = vmatpush3.bf16.msra.mxu1 %v279_v7 }
  0x1f   :  { %257 = vmatprep.subr.bf16.mxu1 %v336_v0 }
  0x22   :  { %258 = vmatpush3.bf16.msra.mxu1 %v280_v8 }
  0x23   :  { %259 = vmatprep.subr.bf16.mxu1 %v336_v0 }
  0x26   :  { %260 = vmatpush3.bf16.msra.mxu1 %v281_v9 }
  0x27   :  { %261 = vmatprep.subr.bf16.mxu1 %v336_v0 }
  0x2a   :  { %262 = vmatpush3.bf16.msra.mxu1 %v282_v10 }
  0x2b   :  { %263 = vmatprep.subr.bf16.mxu1 %v336_v0 }
  0x2e   :  { %264 = vmatpush3.bf16.msra.mxu1 %v283_v11 }
  0x2f   :  { %265 = vmatprep.subr.bf16.mxu1 %v336_v0 }
  0x32   :  { %266 = vmatpush3.bf16.msra.mxu1 %v284_v12 }
  0xec   :  { %v88_v14 = vpop.f32.mrb[0].mxu0 }
  0xed   :  { %v89_v15 = vadd.f32 %v223_v13, %v88_v14  ;;  %v249_v16 = vpop.f32.mrb[1].mxu0 }
  0xee   :  { %v91_v17 = vpop.f32.mrb[2].mxu0 }
  0xef   :  { %v94_v18 = vmax.f32 %v89_v15, 0.0  ;;  %v250_v19 = vpop.f32.mrb[3].mxu0 }
  0xf1   :  { %v95_v20 = vpack.c.bf16 %v94_v18, %v94_v18 }
  0xf3   :  { %268 = vmatmul.mubr.bf16.vlgmr.msra.gmra.mrb[0].mxu1 %v95_v20 }
 0x1c6   :  { %v201_v22 = vpop.f32.mrb[0].mxu1 }
 0x1c7   :  { %v202_v23 = vadd.f32 %v225_v21, %v201_v22  ;;  %v269_v24 = vpop.f32.mrb[1].mxu1 }
 0x1c8   :  { %v204_v25 = vpop.f32.mrb[2].mxu1 }
 0x1c9   :  { %207 = vst [vmem:[#allocation5] sm:$0x3] %v202_v23  ;;  %v270_v26 = vpop.f32.mrb[3].mxu1 }
 0x1ca   :  { %318 = shalt.err (!%p315_p12)
}
 0x1cb   :  { %s319_s4 = scalar_lea.hbm %s410_s5, 32 }
 0x1cc   :  { %p320_p13 = scmp.ne.s32.totalorder %s410_s5, %s319_s4  ;;  %p323_p0 = scmp.lt.u32.totalorder %s319_s4, %s410_s5 }
 0x1ce   :  { %p325_p1 = pnand %p323_p0, %p320_p13 }
 0x1d0   :  { %328 = shalt.err (!%p325_p1)
}
 0x1d1   :  { %217 = dma.vmem_to_hbm [thread:$0]  %s215_s13, 32, %s410_s5, [#allocation4]  }
 0x1d2   :  { %331 = dma.done.wait [#allocation4], 32  }
 0x1d3   :  { %332 = vsyncadd [#allocation4], 4294967264 }
 0x1d4   :  { %221 = vsyncpa [#allocation3], 1 }
 0x1d5   :  { %222 = vsyncpa [#allocation4], 1 }

</bundles_post_ra>
